<compile_context>
chip_gen: v7x
topology: tpu7x:2x2x1
jax: 0.10.0
libtpu: 0.0.40
codegen_flags: <defaults>
</compile_context>

<pallas_src>
import functools

import jax
import jax.numpy as jnp
import numpy as np
from jax.experimental import pallas as pl
from jax.experimental.pallas import tpu as pltpu


def _patch_embed_kernel(x_ref, w_ref, b_ref, o_ref):
    # x_ref: (tb, L)   w_ref: (L, N*D)   b_ref: (1, N*D)   o_ref: (tb, N*D)
    acc = jnp.dot(x_ref[...], w_ref[...], preferred_element_type=jnp.float32)
    o_ref[...] = (acc + b_ref[...]).astype(o_ref.dtype)   # single dense lane-wide store


@functools.partial(jax.jit, static_argnames=("patch_len", "stride"))
def patch_embedding(x, weight, bias, *, patch_len, stride):
    """x: (B, L) float32; weight: (patch_len, d_model); bias: (d_model,).

    Returns (B, n_patches, d_model), matching PatchEmbedding.forward in eval mode.
    """
    B, L = x.shape
    P, D = weight.shape
    assert P == patch_len
    n_patches = (L - patch_len) // stride + 1
    assert n_patches >= 1
    ND = n_patches * D

    # ---- fused "unfold" weight: one matmul covers all (possibly overlapping) patches.
    w_full = jnp.zeros((L, ND), dtype=weight.dtype)
    for n in range(n_patches):                       # static, small; traced once
        w_full = w_full.at[n * stride:n * stride + patch_len, n * D:(n + 1) * D].set(weight)
    bias_full = jnp.tile(bias, n_patches).reshape(1, ND)

    # ---- batch-tile size from a conservative VMEM budget (lane-padded sizes).
    lane, sub = 128, 8
    L_pad = -(-L // lane) * lane
    ND_pad = -(-ND // lane) * lane
    row_bytes = 4 * (L_pad + ND_pad)                 # in + out bytes per batch row (f32)
    budget = 12 * 1024 * 1024                        # double-buffered tiles; fits v5e's 16 MiB
                                                     # default scoped VMEM, << v7x 64 MiB physical
    tb = max(sub, budget // (2 * row_bytes))
    tb = min(tb, 4096)                               # >= ~2K rows reaches HBM roofline; keeps
                                                     # >=2 grid steps for v7x megacore at large B
    if tb >= B:
        tb = B                                       # full-dim block satisfies the (8,128) rule
    else:
        tb = max(sub, (tb // sub) * sub)             # sublane-aligned partial-batch blocks

    grid = (pl.cdiv(B, tb),)                         # ragged last block masked by Pallas

    out_flat = pl.pallas_call(
        _patch_embed_kernel,
        out_shape=jax.ShapeDtypeStruct((B, ND), x.dtype),
        grid=grid,
        in_specs=[
            pl.BlockSpec((tb, L), lambda i: (i, 0)),     # activation: lane-dense, L last
            pl.BlockSpec((L, ND), lambda i: (0, 0)),     # fused weight: resident across grid
            pl.BlockSpec((1, ND), lambda i: (0, 0)),     # tiled bias:  resident across grid
        ],
        out_specs=pl.BlockSpec((tb, ND), lambda i: (i, 0)),   # flat, lane-dense output block
        compiler_params=pltpu.CompilerParams(
            dimension_semantics=("parallel",),           # shard batch tiles across TCs (v7x)
        ),
    )(x, w_full, bias_full)

    # dropout(p) in eval mode == identity; reshape to (B, N, D) is a free contiguous view.
    return out_flat.reshape(B, n_patches, D)


def _reference(x, weight, bias, patch_len, stride):
    L = x.shape[1]
    starts = list(range(0, L - patch_len + 1, stride))
    patches = jnp.stack([x[:, i:i + patch_len] for i in starts], axis=1)   # (B, N, P)
    return patches @ weight + bias


if __name__ == "__main__":
    # Hyperparameters implied by the module
    d_model = 32
    patch_len = 16
    stride = 8

    key = jax.random.PRNGKey(0)
    kx, kw, kb, kx2 = jax.random.split(key, 4)

    # Deterministic Linear(patch_len, d_model) params (PyTorch-style uniform init)
    bound = 1.0 / np.sqrt(patch_len)
    weight = jax.random.uniform(kw, (patch_len, d_model), jnp.float32, -bound, bound)
    bias = jax.random.uniform(kb, (d_model,), jnp.float32, -bound, bound)

    # --- small test: B=2, L=64 -> num_patches = (64 - 16)//8 + 1 = 7 ---
    B, L = 2, 64
    x = jax.random.normal(kx, (B, L), dtype=jnp.float32)
    out = patch_embedding(x, weight, bias, patch_len=patch_len, stride=stride)
    out = jax.block_until_ready(out)
    ref = _reference(x, weight, bias, patch_len, stride)
    assert out.shape == (B, 7, d_model), out.shape
    np.testing.assert_allclose(np.asarray(out), np.asarray(ref), rtol=1e-5, atol=1e-5)

    # --- second test exercising the multi-step grid + ragged (masked) last block ---
    B2, L2 = 5000, 64                                  # tb=4096 -> 2 grid steps, last ragged
    x2 = jax.random.normal(kx2, (B2, L2), dtype=jnp.float32)
    out2 = patch_embedding(x2, weight, bias, patch_len=patch_len, stride=stride)
    out2 = jax.block_until_ready(out2)
    ref2 = _reference(x2, weight, bias, patch_len, stride)
    assert out2.shape == (B2, 7, d_model), out2.shape
    np.testing.assert_allclose(np.asarray(out2), np.asarray(ref2), rtol=1e-5, atol=1e-5)

    print("KERNEL_OK")
</pallas_src>

<mosaic_0001>
module attributes {stable_mosaic.version = 11 : i64} {
  func.func @_patch_embed_kernel(%arg0: i32, %arg1: memref<2x64xf32, #tpu.memory_space<vmem>>, %arg2: memref<64x224xf32, #tpu.memory_space<vmem>>, %arg3: memref<1x224xf32, #tpu.memory_space<vmem>>, %arg4: memref<2x224xf32, #tpu.memory_space<vmem>>) attributes {dimension_semantics = [#tpu.dimension_semantics<parallel>], iteration_bounds = array<i64: 1>, scalar_prefetch = 0 : i64, scratch_operands = 0 : i64, tpu.core_type = #tpu.core_type<tc>, window_params = [{transform_indices = @transform_0, window_bounds = array<i64: 2, 64>}, {pipeline_mode = #tpu.pipeline_mode<synchronous>, transform_indices = @transform_1, window_bounds = array<i64: 64, 224>}, {pipeline_mode = #tpu.pipeline_mode<synchronous>, transform_indices = @transform_2, window_bounds = array<i64: 1, 224>}, {transform_indices = @transform_3, window_bounds = array<i64: 2, 224>}]} {
    %c0 = arith.constant 0 : index
    %c0_0 = arith.constant 0 : index
    %0 = vector.load %arg1[%c0, %c0_0] : memref<2x64xf32, #tpu.memory_space<vmem>>, vector<2x64xf32>
    %c0_1 = arith.constant 0 : index
    %c0_2 = arith.constant 0 : index
    %1 = vector.load %arg2[%c0_1, %c0_2] : memref<64x224xf32, #tpu.memory_space<vmem>>, vector<64x224xf32>
    %cst = arith.constant dense<0.000000e+00> : vector<2x224xf32>
    %2 = tpu.matmul %0, %1, %cst {dimension_numbers = #tpu.dot_dimension_numbers<[1], [0], [0], [1], [0, 0, 1, 1], [], []>} : vector<2x64xf32>, vector<64x224xf32>, vector<2x224xf32> -> vector<2x224xf32>
    %c0_3 = arith.constant 0 : index
    %c0_4 = arith.constant 0 : index
    %3 = vector.load %arg3[%c0_3, %c0_4] : memref<1x224xf32, #tpu.memory_space<vmem>>, vector<1x224xf32>
    %4 = vector.broadcast %3 : vector<1x224xf32> to vector<2x224xf32>
    %5 = arith.addf %2, %4 : vector<2x224xf32>
    %c0_5 = arith.constant 0 : index
    %c0_6 = arith.constant 0 : index
    %6 = vector.load %arg4[%c0_5, %c0_6] : memref<2x224xf32, #tpu.memory_space<vmem>>, vector<2x224xf32>
    tpu.vector_store %arg4[%c0_5, %c0_6], %5 {strides = array<i32>} : memref<2x224xf32, #tpu.memory_space<vmem>>, vector<2x224xf32>,
    return
  }
  func.func @transform_0(%arg0: i32) -> (i32, i32) {
    %c0_i32 = arith.constant 0 : i32
    %c0_i32_0 = arith.constant 0 : i32
    return %arg0, %c0_i32 : i32, i32
  }
  func.func @transform_1(%arg0: i32) -> (i32, i32) {
    %c0_i32 = arith.constant 0 : i32
    %c0_i32_0 = arith.constant 0 : i32
    %c0_i32_1 = arith.constant 0 : i32
    return %c0_i32, %c0_i32_0 : i32, i32
  }
  func.func @transform_2(%arg0: i32) -> (i32, i32) {
    %c0_i32 = arith.constant 0 : i32
    %c0_i32_0 = arith.constant 0 : i32
    %c0_i32_1 = arith.constant 0 : i32
    return %c0_i32, %c0_i32_0 : i32, i32
  }
  func.func @transform_3(%arg0: i32) -> (i32, i32) {
    %c0_i32 = arith.constant 0 : i32
    %c0_i32_0 = arith.constant 0 : i32
    return %arg0, %c0_i32 : i32, i32
  }
}

</mosaic_0001>

<bundles_post_ra>
// kernel: tile.8
= control target key start
LH: loop header
LB: loop body
LE: loop exit
PB: predicated region body
PF: predicated region fallthrough
CT: control target
= control target key end

     0   :  { %s22_s0 = inlined_call_operand.vmem [shape: f32[32], index: 0, kind: input, shape index: {}]   ;;  %s23_s1 = inlined_call_operand.vmem [shape: f32[7,32], index: 1, kind: output, shape index: {}]  }
   0x1   :  { %v4_v0 = vld [vmem:[%s22_s0] ss:$0 sm:$0xff] }
   0x2   :  { %5 = vst [vmem:[%s23_s1] sm:$0xff] %v4_v0 }

// kernel: tile.9
= control target key start
LH: loop header
LB: loop body
LE: loop exit
PB: predicated region body
PF: predicated region fallthrough
CT: control target
= control target key end

     0   :  { %s13_s8 = smov 3  ;;  %s44_s9 = smov 96   ;;  %vm4_vm0 = vcmask 261120   ;;  %vm10_vm1 = vcmask 1048320   ;;  %vm17_vm2 = vcmask 785920   ;;  %vm24_vm3 = vcmask 523520   ;;  %s75_s0 = inlined_call_operand.vmem [shape: f32[7,32], index: 0, kind: input, shape index: {}]   ;;  %s76_s1 = inlined_call_operand.vmem [shape: f32[1,224], index: 1, kind: output, shape index: {}]  }
   0x1   :  { %v37_v0 = vld [vmem:[%s75_s0 + $0x3] sm:$0x1]   ;;  %s20_s10 = smov 3  ;;  %v38_v1 = vld [vmem:[%s75_s0 + $0x2] ss:$4 sm:%s13_s8]   ;;  %s2_s15 = smov 3 }
   0x2   :  { %8 = vrot.lane.b32.xlu0 %v37_v0, %s44_s9  ;;  %v39_v2 = vld [vmem:[%s75_s0 + $0x1] ss:$4 sm:%s20_s10]   ;;  %s45_s16 = smov 32  }
   0x3   :  { %22 = vrot.lane.b32.xlu1 %v39_v2, %s45_s16  ;;  %v3_v3 = vld [vmem:[%s75_s0] ss:$4 sm:%s2_s15]   ;;  %s46_s0 = smov 64  }
   0x4   :  { %5 = vst.msk [vmem:[#allocation0] ss:$8 sm:$0x3] %vm4_vm0, %v3_v3  }
   0x6   :  { %15 = vrot.lane.b32.xlu0 %v38_v1, %s46_s0 }
  0x74   :  { %v9_v4 = vpop.permute.xlu0 %8  }
  0x75   :  { %11 = vst.msk [vmem:[#allocation0] sm:$0x1] %vm10_vm1, %v9_v4   ;;  %v23_v5 = vpop.permute.xlu1 %22  }
  0x78   :  { %v16_v6 = vpop.permute.xlu0 %15  }
  0x79   :  { %18 = vst.msk [vmem:[#allocation0] ss:$8 sm:$0x3] %vm17_vm2, %v16_v6  }
  0x7a   :  { %25 = vst.msk [vmem:[#allocation0] ss:$8 sm:$0x3] %vm24_vm3, %v23_v5  }
  0x81   :  { %v29_v7 = vld [vmem:[#allocation0] sm:$0x1]  ;;  %v33_v8 = vld [vmem:[#allocation0 + $0x8] sm:$0x1] }
  0x82   :  { %31 = vst [vmem:[%s76_s1] sm:$0x1] %v29_v7  ;;  %40 = vst [vmem:[%s76_s1 + $0x1] sm:$0x1] %v33_v8 }

// kernel: patch_embedding.1
= control target key start
LH: loop header
LB: loop body
LE: loop exit
PB: predicated region body
PF: predicated region fallthrough
CT: control target
= control target key end

     0   :  { %v156_v3 = vmov 0.0   ;;  %vm43_vm0 = vcmask 523264   ;;  %v33_v26 = vlaneseq  ;;  %v157_v31 = vmov 1983009808   ;;  %s235_s1 = inlined_call_operand.vmem [shape: f32[64,224], index: 1, kind: input, shape index: {}]   ;;  %s236_s0 = inlined_call_operand.vmem [shape: f32[2,64], index: 0, kind: input, shape index: {}]   ;;  %s237_s2 = inlined_call_operand.vmem [shape: f32[1,224], index: 2, kind: input, shape index: {}]   ;;  %s238_s3 = inlined_call_operand.vmem [shape: f32[2,224], index: 3, kind: output, shape index: {}]  }
   0x1   :  { %v16_v0 = vld [vmem:[%s235_s1 + $0x8] sm:$0xff]  ;;  %v18_v1 = vld [vmem:[%s235_s1 + $0x18] sm:$0xff]  ;;  %v15_v2 = vld [vmem:[%s235_s1] sm:$0xff]  ;;  %111 = vmatprep.mubr.f32.mxu0 %v156_v3  ;;  %v122_v32 = vunpack.c.l.s4 %v157_v31  ;;  %vm129_vm1 = vcmask 1041408   ;;  %vm130_vm2 = vcmask 781314  }
   0x2   :  { %v138_v4 = vpack.c.bf16 %v18_v1, %v16_v0  ;;  %v17_v5 = vld [vmem:[%s235_s1 + $0x10] sm:$0xff]  ;;  %v20_v6 = vld [vmem:[%s235_s1 + $0x28] sm:$0xff]  ;;  %v22_v7 = vld [vmem:[%s235_s1 + $0x38] sm:$0xff]  ;;  %v34_v27 = vshrl.u32 %v33_v26, 7 }
   0x3   :  { %v140_v8 = vpack.c.bf16 %v17_v5, %v15_v2  ;;  %v142_v9 = vpack.c.bf16 %v22_v7, %v20_v6  ;;  %v19_v10 = vld [vmem:[%s235_s1 + $0x20] sm:$0xff]  ;;  %v21_v11 = vld [vmem:[%s235_s1 + $0x30] sm:$0xff]  ;;  %v24_v12 = vld [vmem:[%s235_s1 + $0x48] sm:$0xff]  ;;  %v123_v35 = vunpack.c.0.s8 %v122_v32 }
   0x4   :  { %139 = vmatprep.subr.bf16.mxu0 %v138_v4  ;;  %v26_v13 = vld [vmem:[%s235_s1 + $0x58] sm:$0xff]  ;;  %v144_v14 = vpack.c.bf16 %v21_v11, %v19_v10  ;;  %v23_v16 = vld [vmem:[%s235_s1 + $0x40] sm:$0xff]  ;;  %v25_v17 = vld [vmem:[%s235_s1 + $0x50] sm:$0xff]  ;;  %v35_v28 = vsub.s32 0, %v34_v27  ;;  %v39_v30 = vsub.s32 1, %v34_v27 }
   0x5   :  { %141 = vmatpush1.bf16.msra.mxu0 %v140_v8  ;;  %v146_v15 = vpack.c.bf16 %v26_v13, %v24_v12  ;;  %v28_v18 = vld [vmem:[%s235_s1 + $0x68] sm:$0xff]  ;;  %v30_v19 = vld [vmem:[%s235_s1 + $0x78] sm:$0xff]  ;;  %v148_v20 = vpack.c.bf16 %v25_v17, %v23_v16  ;;  %v27_v22 = vld [vmem:[%s235_s1 + $0x60] sm:$0xff]  ;;  %v126_v40 = vsub.s32 %v123_v35, %v34_v27 }
   0x6   :  { %143 = vmatprep.subr.bf16.mxu0 %v142_v9  ;;  %v150_v21 = vpack.c.bf16 %v30_v19, %v28_v18  ;;  %v29_v23 = vld [vmem:[%s235_s1 + $0x70] sm:$0xff]  ;;  %v14_v25 = vld [vmem:[%s236_s0] sm:$0x3]  ;;  %vm131_vm3 = vmor %vm130_vm2, %vm129_vm1 }
   0x7   :  { %v152_v24 = vpack.c.bf16 %v29_v23, %v27_v22  ;;  %v31_v29 = vld [vmem:[%s237_s2] sm:$0x3] }
   0x8   :  { %v36_v33 = vrot.slane %v31_v29, %v35_v28  ;;  %v40_v34 = vrot.slane %v31_v29, %v39_v30 }
   0x9   :  { %145 = vmatpush1.bf16.msra.mxu0 %v144_v14 }
   0xa   :  { %147 = vmatprep.subr.bf16.mxu0 %v146_v15 }
   0xd   :  { %149 = vmatpush1.bf16.msra.mxu0 %v148_v20 }
   0xe   :  { %151 = vmatprep.subr.bf16.mxu0 %v150_v21 }
  0x11   :  { %153 = vmatpush1.bf16.msra.mxu0 %v152_v24 }
  0x14   :  { %137 = vmatmul.mubr.msk.f32.vlgmr.msra.gmra.mrb[0].mxu0 %vm43_vm0, %v14_v25 }
  0xe7   :  { %v113_v36 = vpop.f32.mrb[0].mxu0 }
  0xe8   :  { %v114_v37 = vadd.f32 %v113_v36, %v36_v33  ;;  %v115_v38 = vpop.f32.mrb[1].mxu0 }
  0xe9   :  { %v116_v39 = vadd.f32 %v115_v38, %v40_v34 }
  0xeb   :  { %v120_v41 = vcombine.low %v114_v37, %v116_v39 }
  0xed   :  { %v127_v42 = vrot.slane %v120_v41, %v126_v40 }
  0xef   :  { %132 = vst.msk [vmem:[%s238_s3] sm:$0xf] %vm131_vm3, %v127_v42 }

</bundles_post_ra>
